<compile_context>
chip_gen: v5e
topology: v5e:2x2
jax: 0.10.0
libtpu: 0.0.40
codegen_flags: <defaults>
</compile_context>

<pallas_src>
import functools

import jax
import jax.numpy as jnp
from jax import lax
from jax.experimental import pallas as pl
from jax.experimental.pallas import tpu as pltpu


# ---------------------------------------------------------------------------
# In-kernel helpers
# ---------------------------------------------------------------------------

def _valid_rows(S, TS):
    """[TS, 1] bool mask of rows of the current tile that are < S."""
    base = pl.program_id(0) * TS
    row = lax.broadcasted_iota(jnp.int32, (TS, 1), 0) + base
    return row < S


# ---------------------------------------------------------------------------
# Pallas kernels (S, TS are baked in as static Python ints via partial)
# ---------------------------------------------------------------------------

def _mean_pool_classify_kernel(S, TS, x_ref, wc_ref, bc_ref, out_ref, acc_ref):
    i = pl.program_id(0)

    @pl.when(i == 0)
    def _():
        acc_ref[...] = jnp.zeros_like(acc_ref)

    x = x_ref[...].astype(jnp.float32)                       # [TS, H]
    if S % TS != 0:                                          # static check
        x = jnp.where(_valid_rows(S, TS), x, 0.0)
    ones_row = jnp.ones((1, TS), jnp.float32)
    # Row-sum as a K=TS matmul on the MXU (XLU stays free).
    acc_ref[...] += jnp.dot(ones_row, x, preferred_element_type=jnp.float32)

    @pl.when(i == pl.num_programs(0) - 1)
    def _():
        pooled = acc_ref[...] * (1.0 / S)                    # static 1/S folded
        out_ref[...] = (
            jnp.dot(pooled, wc_ref[...], preferred_element_type=jnp.float32)
            + bc_ref[...]
        )


def _wavg_pool_classify_kernel(S, TS, w_ref, x_ref, wc_ref, bc_ref,
                               out_ref, acc_ref):
    # Externally supplied averaging weights, given as a zero-padded [1, TS] row.
    i = pl.program_id(0)

    @pl.when(i == 0)
    def _():
        acc_ref[...] = jnp.zeros_like(acc_ref)

    x = x_ref[...].astype(jnp.float32)
    if S % TS != 0:
        x = jnp.where(_valid_rows(S, TS), x, 0.0)
    acc_ref[...] += jnp.dot(w_ref[...], x, preferred_element_type=jnp.float32)

    @pl.when(i == pl.num_programs(0) - 1)
    def _():
        out_ref[...] = (
            jnp.dot(acc_ref[...], wc_ref[...], preferred_element_type=jnp.float32)
            + bc_ref[...]
        )


def _max_pool_classify_kernel(S, TS, x_ref, wc_ref, bc_ref, out_ref, acc_ref):
    i = pl.program_id(0)

    @pl.when(i == 0)
    def _():
        acc_ref[...] = jnp.full_like(acc_ref, -jnp.inf)

    x = x_ref[...].astype(jnp.float32)
    if S % TS != 0:
        x = jnp.where(_valid_rows(S, TS), x, -jnp.inf)
    acc_ref[...] = jnp.maximum(acc_ref[...], jnp.max(x, axis=0, keepdims=True))

    @pl.when(i == pl.num_programs(0) - 1)
    def _():
        out_ref[...] = (
            jnp.dot(acc_ref[...], wc_ref[...], preferred_element_type=jnp.float32)
            + bc_ref[...]
        )


def _attn_pool_classify_kernel(S, TS, x_ref, wa_ref, ba_ref, wc_ref, bc_ref,
                               out_ref, m_ref, l_ref, acc_ref):
    # Single-pass online softmax over S-tiles (flash style).
    i = pl.program_id(0)

    @pl.when(i == 0)
    def _():
        m_ref[...] = jnp.full_like(m_ref, -jnp.inf)
        l_ref[...] = jnp.zeros_like(l_ref)
        acc_ref[...] = jnp.zeros_like(acc_ref)

    x = x_ref[...].astype(jnp.float32)                       # [TS, H]
    # weight_model: Linear(H, 1) -> scores [TS, 1]
    s = jnp.dot(x, wa_ref[...], preferred_element_type=jnp.float32) + ba_ref[...]
    if S % TS != 0:
        valid = _valid_rows(S, TS)
        s = jnp.where(valid, s, -jnp.inf)
        x = jnp.where(valid, x, 0.0)

    m_old = m_ref[...]                                       # [1, 1]
    m_new = jnp.maximum(m_old, jnp.max(s, axis=0, keepdims=True))
    alpha = jnp.exp(m_old - m_new)                           # [1, 1]
    p = jnp.exp(s - m_new)                                   # [TS, 1]

    l_ref[...] = alpha * l_ref[...] + jnp.sum(p, axis=0, keepdims=True)
    ones_row = jnp.ones((1, TS), jnp.float32)
    # sum_s p[s] * x[s, :] as a ones-row matmul (MXU), no transposes.
    acc_ref[...] = alpha * acc_ref[...] + jnp.dot(
        ones_row, p * x, preferred_element_type=jnp.float32)
    m_ref[...] = m_new

    @pl.when(i == pl.num_programs(0) - 1)
    def _():
        pooled = acc_ref[...] * pl.reciprocal(l_ref[...], approx=True)
        out_ref[...] = (
            jnp.dot(pooled, wc_ref[...], preferred_element_type=jnp.float32)
            + bc_ref[...]
        )


# ---------------------------------------------------------------------------
# Wrapper
# ---------------------------------------------------------------------------

def _choose_tile_rows(S, H, itemsize, max_tile_rows=None,
                      buf_budget=12 * 1024 * 1024):
    """Rows per S-tile: largest multiple of 128 fitting ~12 MiB/buffer."""
    rows = max(128, buf_budget // max(1, H * itemsize))
    if max_tile_rows is not None:
        rows = min(rows, max_tile_rows)
    rows = max(128, (rows // 128) * 128)
    if S <= rows:
        return S            # single tile: block == full dim (always legal)
    return rows             # multiple of 128 -> satisfies (8,128)/lane rules


def long_seq_classifier_forward(sequences_reps, params, pool_type="avg",
                                learn_attn_weights=False, avg_weights=None,
                                labels=None, max_tile_rows=None,
                                transfer_dtype=None):
    """Pallas implementation of LongSequenceClassifierComponent.forward.

    sequences_reps: [num_sents, input_size]
    params: 'wc' [H, L], 'bc' [L]; if learn_attn_weights also 'wa' [H, 1],
            'ba' [1].  (Linear weights are stored pre-transposed so the
            kernel computes y = x @ W + b directly on the MXU.)
    Returns logits [1, num_labels], or scalar CE loss if labels is not None.
    """
    assert not (pool_type != "avg" and avg_weights is not None)
    assert not (learn_attn_weights and avg_weights is not None)

    S, H = sequences_reps.shape
    L = params["wc"].shape[1]

    x = sequences_reps
    if transfer_dtype is not None:
        x = x.astype(transfer_dtype)     # e.g. bf16 transfer; f32 accum in-kernel
    elif x.dtype != jnp.float32:
        x = x.astype(jnp.float32)
    wc = params["wc"].astype(jnp.float32)
    bc = params["bc"].reshape(1, L).astype(jnp.float32)

    itemsize = jnp.dtype(x.dtype).itemsize
    TS = _choose_tile_rows(S, H, itemsize, max_tile_rows)
    nt = (S + TS - 1) // TS

    x_spec = pl.BlockSpec((TS, H), lambda i: (i, 0))
    wc_spec = pl.BlockSpec((H, L), lambda i: (0, 0))     # resident: same block
    bc_spec = pl.BlockSpec((1, L), lambda i: (0, 0))     # every grid step
    out_spec = pl.BlockSpec((1, L), lambda i: (0, 0))
    out_shape = jax.ShapeDtypeStruct((1, L), jnp.float32)
    acc = pltpu.VMEM((1, H), jnp.float32)

    # Explicit VMEM budget: 2 x-buffers + resident weights + scratch + margin.
    weight_bytes = (H * L + L + H + 1 + 3 * H) * 4
    vmem_limit = int(2 * TS * H * itemsize + weight_bytes + (4 << 20))
    vmem_limit = min(max(vmem_limit, 16 << 20), 64 << 20)
    cparams = pltpu.CompilerParams(
        dimension_semantics=("arbitrary",),               # S is a reduction axis
        vmem_limit_bytes=vmem_limit)

    if learn_attn_weights:
        assert pool_type == "avg"
        wa = params["wa"].astype(jnp.float32)
        ba = params["ba"].reshape(1, 1).astype(jnp.float32)
        grid_spec = pltpu.PrefetchScalarGridSpec(
            num_scalar_prefetch=0, grid=(nt,),
            in_specs=[x_spec,
                      pl.BlockSpec((H, 1), lambda i: (0, 0)),
                      pl.BlockSpec((1, 1), lambda i: (0, 0)),
                      wc_spec, bc_spec],
            out_specs=out_spec,
            scratch_shapes=[pltpu.VMEM((1, 1), jnp.float32),   # running max
                            pltpu.VMEM((1, 1), jnp.float32),   # running denom
                            acc])
        logits = pl.pallas_call(
            functools.partial(_attn_pool_classify_kernel, S, TS),
            out_shape=out_shape, grid_spec=grid_spec,
            compiler_params=cparams,
        )(x, wa, ba, wc, bc)
    elif pool_type == "avg" and avg_weights is not None:
        w_row = jnp.zeros((1, nt * TS), jnp.float32)
        w_row = w_row.at[0, :S].set(avg_weights.reshape(-1).astype(jnp.float32))
        grid_spec = pltpu.PrefetchScalarGridSpec(
            num_scalar_prefetch=0, grid=(nt,),
            in_specs=[pl.BlockSpec((1, TS), lambda i: (0, i)),
                      x_spec, wc_spec, bc_spec],
            out_specs=out_spec,
            scratch_shapes=[acc])
        logits = pl.pallas_call(
            functools.partial(_wavg_pool_classify_kernel, S, TS),
            out_shape=out_shape, grid_spec=grid_spec,
            compiler_params=cparams,
        )(w_row, x, wc, bc)
    elif pool_type == "avg":
        grid_spec = pltpu.PrefetchScalarGridSpec(
            num_scalar_prefetch=0, grid=(nt,),
            in_specs=[x_spec, wc_spec, bc_spec],
            out_specs=out_spec,
            scratch_shapes=[acc])
        logits = pl.pallas_call(
            functools.partial(_mean_pool_classify_kernel, S, TS),
            out_shape=out_shape, grid_spec=grid_spec,
            compiler_params=cparams,
        )(x, wc, bc)
    elif pool_type == "max":
        grid_spec = pltpu.PrefetchScalarGridSpec(
            num_scalar_prefetch=0, grid=(nt,),
            in_specs=[x_spec, wc_spec, bc_spec],
            out_specs=out_spec,
            scratch_shapes=[acc])
        logits = pl.pallas_call(
            functools.partial(_max_pool_classify_kernel, S, TS),
            out_shape=out_shape, grid_spec=grid_spec,
            compiler_params=cparams,
        )(x, wc, bc)
    else:
        # TODO(synk): BertPoolType.RNN (LSTM) pooling not implemented in Pallas.
        raise NotImplementedError(f"pool_type {pool_type} not supported")

    if labels is not None:
        # CrossEntropyLoss on [1, num_labels] logits (glue, not hot path).
        logp = jax.nn.log_softmax(logits, axis=-1)
        loss = -jnp.take_along_axis(logp, labels.reshape(-1, 1), axis=-1).mean()
        return loss
    return logits


# ---------------------------------------------------------------------------
# Main
# ---------------------------------------------------------------------------

if __name__ == "__main__":
    key = jax.random.PRNGKey(0)

    def make_params(k, H, L):
        k_wc, k_bc, k_wa, k_ba = jax.random.split(k, 4)
        return {
            "wc": jax.random.normal(k_wc, (H, L), jnp.float32) * 0.1,
            "bc": jax.random.normal(k_bc, (L,), jnp.float32) * 0.1,
            "wa": jax.random.normal(k_wa, (H, 1), jnp.float32) * 0.1,
            "ba": jax.random.normal(k_ba, (1,), jnp.float32) * 0.1,
        }

    def refs(x, p):
        mean = jnp.mean(x, 0, keepdims=True) @ p["wc"] + p["bc"][None, :]
        mx = jnp.max(x, 0, keepdims=True) @ p["wc"] + p["bc"][None, :]
        w = jax.nn.softmax(x @ p["wa"] + p["ba"][None, :], axis=0)
        attn = jnp.sum(w * x, 0, keepdims=True) @ p["wc"] + p["bc"][None, :]
        return mean, mx, attn

    # --- small config (single tile): num_sents=8, input_size=32, labels=2 ---
    k0, k1, k2 = jax.random.split(key, 3)
    S, H, L = 8, 32, 2
    x = jax.random.normal(k0, (S, H), jnp.float32)
    p = make_params(k1, H, L)
    labels = jnp.array([1], jnp.int32)
    aw = jax.random.uniform(k2, (S,), jnp.float32)

    logits_avg = long_seq_classifier_forward(x, p, pool_type="avg")
    logits_max = long_seq_classifier_forward(x, p, pool_type="max")
    logits_attn = long_seq_classifier_forward(x, p, pool_type="avg",
                                              learn_attn_weights=True)
    logits_wavg = long_seq_classifier_forward(x, p, pool_type="avg",
                                              avg_weights=aw)
    loss = long_seq_classifier_forward(x, p, pool_type="avg", labels=labels)
    jax.block_until_ready((logits_avg, logits_max, logits_attn,
                           logits_wavg, loss))

    ref_avg, ref_max, ref_attn = refs(x, p)
    ref_wavg = (aw[:, None] * x).sum(0, keepdims=True) @ p["wc"] + p["bc"][None, :]
    assert jnp.allclose(logits_avg, ref_avg, atol=1e-3), (logits_avg, ref_avg)
    assert jnp.allclose(logits_max, ref_max, atol=1e-3), (logits_max, ref_max)
    assert jnp.allclose(logits_attn, ref_attn, atol=5e-3), (logits_attn, ref_attn)
    assert jnp.allclose(logits_wavg, ref_wavg, atol=1e-3), (logits_wavg, ref_wavg)
    assert bool(jnp.isfinite(loss))

    # --- tiled config: 300 rows, 128-row tiles -> 3 grid steps, masked tail ---
    S2, H2 = 300, 128
    x2 = jax.random.normal(k2, (S2, H2), jnp.float32)
    p2 = make_params(k1, H2, L)
    la2 = long_seq_classifier_forward(x2, p2, pool_type="avg", max_tile_rows=128)
    lm2 = long_seq_classifier_forward(x2, p2, pool_type="max", max_tile_rows=128)
    lt2 = long_seq_classifier_forward(x2, p2, pool_type="avg",
                                      learn_attn_weights=True, max_tile_rows=128)
    jax.block_until_ready((la2, lm2, lt2))
    ra2, rm2, rt2 = refs(x2, p2)
    assert jnp.allclose(la2, ra2, atol=1e-3), (la2, ra2)
    assert jnp.allclose(lm2, rm2, atol=1e-3), (lm2, rm2)
    assert jnp.allclose(lt2, rt2, atol=5e-3), (lt2, rt2)

    print("KERNEL_OK")
</pallas_src>

<mosaic_0001>
module attributes {stable_mosaic.version = 11 : i64} {
  func.func @_mean_pool_classify_kernel(%arg0: i32, %arg1: memref<8x32xf32, #tpu.memory_space<vmem>>, %arg2: memref<32x2xf32, #tpu.memory_space<vmem>>, %arg3: memref<1x2xf32, #tpu.memory_space<vmem>>, %arg4: memref<1x2xf32, #tpu.memory_space<vmem>>, %arg5: memref<1x32xf32, #tpu.memory_space<vmem>>) attributes {dimension_semantics = [#tpu.dimension_semantics<arbitrary>], iteration_bounds = array<i64: 1>, scalar_prefetch = 0 : i64, scratch_operands = 1 : i64, tpu.core_type = #tpu.core_type<tc>, window_params = [{transform_indices = @transform_0, window_bounds = array<i64: 8, 32>}, {pipeline_mode = #tpu.pipeline_mode<synchronous>, transform_indices = @transform_1, window_bounds = array<i64: 32, 2>}, {pipeline_mode = #tpu.pipeline_mode<synchronous>, transform_indices = @transform_2, window_bounds = array<i64: 1, 2>}, {pipeline_mode = #tpu.pipeline_mode<synchronous>, transform_indices = @transform_3, window_bounds = array<i64: 1, 2>}]} {
    %c0_i32 = arith.constant 0 : i32
    %0 = arith.cmpi eq, %arg0, %c0_i32 : i32
    %1 = arith.extui %0 : i1 to i32
    %c0_i32_0 = arith.constant 0 : i32
    %2 = arith.cmpi ne, %1, %c0_i32_0 : i32
    scf.if %2 {
      %cst_9 = arith.constant 0.000000e+00 : f32
      %12 = vector.broadcast %cst_9 : f32 to vector<1x32xf32>
      %c0_10 = arith.constant 0 : index
      %c0_11 = arith.constant 0 : index
      %13 = vector.load %arg5[%c0_10, %c0_11] : memref<1x32xf32, #tpu.memory_space<vmem>>, vector<1x32xf32>
      tpu.vector_store %arg5[%c0_10, %c0_11], %12 {strides = array<i32>} : memref<1x32xf32, #tpu.memory_space<vmem>>, vector<1x32xf32>,
    } else {
    }
    %c0 = arith.constant 0 : index
    %c0_1 = arith.constant 0 : index
    %3 = vector.load %arg1[%c0, %c0_1] : memref<8x32xf32, #tpu.memory_space<vmem>>, vector<8x32xf32>
    %cst = arith.constant 1.000000e+00 : f32
    %4 = vector.broadcast %cst : f32 to vector<1x8xf32>
    %c0_2 = arith.constant 0 : index
    %c0_3 = arith.constant 0 : index
    %5 = vector.load %arg5[%c0_2, %c0_3] : memref<1x32xf32, #tpu.memory_space<vmem>>, vector<1x32xf32>
    %cst_4 = arith.constant dense<0.000000e+00> : vector<1x32xf32>
    %6 = tpu.matmul %4, %3, %cst_4 {dimension_numbers = #tpu.dot_dimension_numbers<[1], [0], [0], [1], [0, 0, 1, 1], [], []>} : vector<1x8xf32>, vector<8x32xf32>, vector<1x32xf32> -> vector<1x32xf32>
    %7 = arith.addf %5, %6 : vector<1x32xf32>
    %c0_5 = arith.constant 0 : index
    %c0_6 = arith.constant 0 : index
    %8 = vector.load %arg5[%c0_5, %c0_6] : memref<1x32xf32, #tpu.memory_space<vmem>>, vector<1x32xf32>
    tpu.vector_store %arg5[%c0_5, %c0_6], %7 {strides = array<i32>} : memref<1x32xf32, #tpu.memory_space<vmem>>, vector<1x32xf32>,
    %c0_i32_7 = arith.constant 0 : i32
    %9 = arith.cmpi eq, %arg0, %c0_i32_7 : i32
    %10 = arith.extui %9 : i1 to i32
    %c0_i32_8 = arith.constant 0 : i32
    %11 = arith.cmpi ne, %10, %c0_i32_8 : i32
    scf.if %11 {
      %c0_9 = arith.constant 0 : index
      %c0_10 = arith.constant 0 : index
      %12 = vector.load %arg5[%c0_9, %c0_10] : memref<1x32xf32, #tpu.memory_space<vmem>>, vector<1x32xf32>
      %cst_11 = arith.constant 1.250000e-01 : f32
      %13 = vector.broadcast %cst_11 : f32 to vector<1x32xf32>
      %14 = arith.mulf %12, %13 : vector<1x32xf32>
      %c0_12 = arith.constant 0 : index
      %c0_13 = arith.constant 0 : index
      %15 = vector.load %arg2[%c0_12, %c0_13] : memref<32x2xf32, #tpu.memory_space<vmem>>, vector<32x2xf32>
      %cst_14 = arith.constant dense<0.000000e+00> : vector<1x2xf32>
      %16 = tpu.matmul %14, %15, %cst_14 {dimension_numbers = #tpu.dot_dimension_numbers<[1], [0], [0], [1], [0, 0, 1, 1], [], []>} : vector<1x32xf32>, vector<32x2xf32>, vector<1x2xf32> -> vector<1x2xf32>
      %c0_15 = arith.constant 0 : index
      %c0_16 = arith.constant 0 : index
      %17 = vector.load %arg3[%c0_15, %c0_16] : memref<1x2xf32, #tpu.memory_space<vmem>>, vector<1x2xf32>
      %18 = arith.addf %16, %17 : vector<1x2xf32>
      %c0_17 = arith.constant 0 : index
      %c0_18 = arith.constant 0 : index
      %19 = vector.load %arg4[%c0_17, %c0_18] : memref<1x2xf32, #tpu.memory_space<vmem>>, vector<1x2xf32>
      tpu.vector_store %arg4[%c0_17, %c0_18], %18 {strides = array<i32>} : memref<1x2xf32, #tpu.memory_space<vmem>>, vector<1x2xf32>,
    } else {
    }
    return
  }
  func.func @transform_0(%arg0: i32) -> (i32, i32) {
    %c0_i32 = arith.constant 0 : i32
    %c0_i32_0 = arith.constant 0 : i32
    return %arg0, %c0_i32 : i32, i32
  }
  func.func @transform_1(%arg0: i32) -> (i32, i32) {
    %c0_i32 = arith.constant 0 : i32
    %c0_i32_0 = arith.constant 0 : i32
    %c0_i32_1 = arith.constant 0 : i32
    return %c0_i32, %c0_i32_0 : i32, i32
  }
  func.func @transform_2(%arg0: i32) -> (i32, i32) {
    %c0_i32 = arith.constant 0 : i32
    %c0_i32_0 = arith.constant 0 : i32
    %c0_i32_1 = arith.constant 0 : i32
    return %c0_i32, %c0_i32_0 : i32, i32
  }
  func.func @transform_3(%arg0: i32) -> (i32, i32) {
    %c0_i32 = arith.constant 0 : i32
    %c0_i32_0 = arith.constant 0 : i32
    %c0_i32_1 = arith.constant 0 : i32
    return %c0_i32, %c0_i32_0 : i32, i32
  }
}

</mosaic_0001>

<bundles_post_ra>
// kernel: tpu_custom_call.1
= control target key start
LH: loop header
LB: loop body
LE: loop exit
PB: predicated region body
PF: predicated region fallthrough
CT: control target
= control target key end

     0   :  { %vm23_vm0 = vcmask 64512   ;;  %vm19_vm1 = vcmask 253952   ;;  %v133_v1 = vmov 0.0   ;;  %s179_s0 = inlined_call_operand.vmem [shape: f32[8,32], index: 0, kind: input, shape index: {}]   ;;  %s180_s1 = inlined_call_operand.vmem [shape: f32[32,2], index: 1, kind: input, shape index: {}]   ;;  %s181_s2 = inlined_call_operand.vmem [shape: f32[1,2], index: 2, kind: input, shape index: {}]   ;;  %s182_s3 = inlined_call_operand.hbm [shape: f32[1,2], index: 3, kind: output, shape index: {}]  }
   0x1   :  { %v21_v0 = vld [vmem:[%s179_s0] sm:$0xff]  ;;  %20 = vst.msk [vmem:[#allocation2] sm:$0x1] %vm19_vm1, %v133_v1 }
   0x2   :  { %42 = vmatpush.msra.mxu0 %v21_v0 }
   0x3   :  { %8 = vsyncpa [#allocation4], 0  ;;  %v134_v2 = vmov 1.0   ;;  %v58_v3 = vld [vmem:[%s180_s1 + $0x18] sm:$0xff]  ;;  %v57_v4 = vld [vmem:[%s180_s1 + $0x10] sm:$0xff]  ;;  %vm60_vm2 = vcmask 261120  }
   0x4   :  { %102 = vmatmul.msk.f32.vlgmr.msra.gmra.mxu0 %vm23_vm0, %v134_v2  ;;  %76 = vmatpush.msra.mxu1 %v58_v3  ;;  %v56_v5 = vld [vmem:[%s180_s1 + $0x8] sm:$0xff]  ;;  %v55_v6 = vld [vmem:[%s180_s1] sm:$0xff]  ;;  %s135_s23 = smov [#allocation3]   ;;  %s93_s1 = sshll.u32 %s182_s3, 4  ;;  %vm84_vm3 = vcmask 8192   ;;  %s94_s1 = int_to_ptr.hbm [resolvable:$true] %s93_s1 }
   0x5   :  { %v59_v12 = vld [vmem:[%s181_s2] sm:$0x1]  ;;  %s91_s24 = sshll.u32 %s135_s23, 4  ;;  %s92_s24 = int_to_ptr.vmem [resolvable:$true] %s91_s24 }
   0x6   :  { %77 = vmatpush.msra.mxu1 %v57_v4 }
   0x8   :  { %78 = vmatpush.msra.mxu1 %v56_v5  ;;  %v22_v7 = vld [vmem:[#allocation2] sm:$0x1] }
   0xa   :  { %79 = vmatpush.msra.mxu1 %v55_v6 }
  0x81   :  { %v44_v8 = vpop.f32.mrf.mxu0 }
  0x82   :  { %v47_v9 = vadd.f32 %v44_v8, %v22_v7 }
  0x84   :  { %49 = vst.msk [vmem:[#allocation2] sm:$0x1] %vm19_vm1, %v47_v9 }
  0x8b   :  { %v53_v10 = vld [vmem:[#allocation2] sm:$0x1] }
  0x8c   :  { %v54_v11 = vmul.f32 0.125, %v53_v10 }
  0x8e   :  { %103 = vmatmul.msk.f32.vlgmr.msra.gmra.mxu1 %vm60_vm2, %v54_v11 }
 0x10b   :  { %v81_v13 = vpop.f32.mrf.mxu1 }
 0x10c   :  { %v82_v14 = vadd.f32 %v81_v13, %v59_v12 }
 0x10e   :  { %85 = vst.msk [vmem:[#allocation3] sm:$0x1] %vm84_vm3, %v82_v14 }
 0x10f   :  { %96 = dma.vmem_to_hbm [thread:$0]  %s92_s24, 16, %s94_s1, [#allocation4]  }
 0x110   :  { %131 = dma.done.wait [#allocation4], 16  }
 0x111   :  { %132 = vsyncadd [#allocation4], 4294967280 }
 0x112   :  { %101 = vsyncpa [#allocation4], 1 }

</bundles_post_ra>
